<compile_context>
chip_gen: v5e
topology: v5e:2x2
jax: 0.10.0
libtpu: 0.0.40
codegen_flags: <defaults>
</compile_context>

<pallas_src>
import functools

import jax
import jax.numpy as jnp
import numpy as np
from jax import lax
from jax.experimental import pallas as pl
from jax.experimental.pallas import tpu as pltpu

LANES = 128
SUBLANES = 8

# Cap on the resident (single-pass) path, further limited by the VMEM budget.
RESIDENT_MAX_ELEMS = 4 * 1024 * 1024


@functools.lru_cache(maxsize=None)
def _vmem_limit_bytes():
    """Per-generation VMEM request: ~3/4 of capacity, capped at 96 MiB.
    v7x (64 MiB) -> 48 MiB; v5e/v6e (128 MiB) -> 96 MiB; safe fallback 48 MiB."""
    try:
        cap = int(pltpu.get_tpu_info().vmem_capacity_bytes)
    except Exception:
        cap = 64 * 1024 * 1024
    return int(min(cap * 3 // 4, 96 * 1024 * 1024))


# --------------------------- shared elementwise math ----------------------- #
def _apply_quant(w, inv, nbit_w, out_dtype):
    """w = tanh(x) (f32); inv = 0.5 / max|tanh(x)| (scalar or (1,1)).

    Algebraically identical to:  t = w*inv + 0.5 ;
      q = round((2^n-1)*t)/(2^n-1)  (identity for n==32) ;  out = 2*q - 1,
    with the constant multiplications folded into the scalar.
    """
    if nbit_w == 32:
        out = w * (2.0 * inv)                       # == 2*(w*inv + 0.5) - 1
    else:
        scale = float(2 ** nbit_w - 1)
        out = jnp.round(w * (scale * inv) + (0.5 * scale)) * (2.0 / scale) - 1.0
    return out.astype(out_dtype)


# ------------------------------- kernels ----------------------------------- #
def _dorefa_resident_kernel(x_ref, o_ref, *, nbit_w):
    """Single-pass DoReFa-W: whole tensor resident in VMEM (tanh computed once)."""
    w = jnp.tanh(x_ref[...].astype(jnp.float32))
    a = jnp.abs(w)
    if a.shape[0] % SUBLANES == 0 and a.shape[0] > SUBLANES:
        # Fold to one vreg with elementwise maxima before the cross-lane reduce.
        a = a.reshape(-1, SUBLANES, LANES).max(axis=0)
    maxv = jnp.max(a, keepdims=True)                # (1, 1)
    inv = 0.5 / maxv                                # divide once, not per element
    o_ref[...] = _apply_quant(w, inv, nbit_w, o_ref.dtype)


def _absmax_kernel(x_ref, mx_ref, *, valid_rows, tile_rows, core_stride):
    """Pass 1: per-core running max of |x| held in the resident (8,128) output
    block; the finalize step emits inv = 0.5 / tanh(max|x|) broadcast into the
    block.  No tanh, no tile-sized scratch, pure VPU per step."""
    c = pl.program_id(0)
    i = pl.program_id(1)

    @pl.when(i == 0)
    def _():
        mx_ref[...] = jnp.zeros_like(mx_ref)

    a = jnp.abs(x_ref[...].astype(jnp.float32))
    start = (c * core_stride + i) * tile_rows       # logical first row of block

    # Common case: block fully inside the array -> fold to one vreg, accumulate.
    @pl.when(start + tile_rows <= valid_rows)
    def _():
        mx_ref[...] = jnp.maximum(
            mx_ref[...], a.reshape(-1, SUBLANES, LANES).max(axis=0))

    # Only the single overhanging block pays the iota/where masking.
    @pl.when(start + tile_rows > valid_rows)
    def _():
        row = start + lax.broadcasted_iota(jnp.int32, a.shape, 0)
        am = jnp.where(row < valid_rows, a, 0.0)
        mx_ref[...] = jnp.maximum(
            mx_ref[...], am.reshape(-1, SUBLANES, LANES).max(axis=0))

    @pl.when(i == pl.num_programs(1) - 1)
    def _():
        # tanh is monotonic: max|tanh(x)| == tanh(max|x|).  One tanh + one divide
        # per core, broadcast into this core's (8,128) output block.
        inv = 0.5 / jnp.tanh(jnp.max(mx_ref[...], keepdims=True))   # (1, 1)
        mx_ref[...] = jnp.zeros_like(mx_ref) + inv


def _quant_kernel(mx_ref, x_ref, o_ref, *, nbit_w):
    """Pass 2: elementwise transform using the precomputed per-core partial
    0.5/tanh(max|x|) values (SMEM); combining them is a scalar min since
    0.5/tanh(.) is decreasing."""
    inv = jnp.minimum(mx_ref[0, 0], mx_ref[SUBLANES, 0])
    w = jnp.tanh(x_ref[...].astype(jnp.float32))
    o_ref[...] = _apply_quant(w, inv, nbit_w, o_ref.dtype)


# ------------------------------- wrapper ------------------------------------ #
def dorefa_w(x, nbit_w, *, tile_rows=8192, resident_max_elems=None):
    """DoReFaW forward. `nbit_w` is a static Python int."""
    orig_shape = x.shape
    orig_dtype = x.dtype
    nbit_w = int(nbit_w)

    vmem_limit = _vmem_limit_bytes()
    if resident_max_elems is None:
        # ~24 B/elem budget: double-buffered f32 in + out plus f32 temporaries.
        resident_max_elems = min(RESIDENT_MAX_ELEMS, vmem_limit // 24)

    xf = x.reshape(-1)
    n = xf.size

    # Common case (n % 128 == 0): pure reshapes, zero copies.  Ragged sizes pad
    # the last partial row (<=127 elems) and slice the output back.
    # TODO(synk): for very large non-128-multiple tensors this pad + slice adds
    # extra HBM traversals; a split prefix/tail path would avoid it.
    n_lane_pad = pl.cdiv(n, LANES) * LANES
    padded = n_lane_pad != n
    if padded:
        xf = jnp.pad(xf, (0, n_lane_pad - n))       # tanh(0)=0: cannot raise max
    x2 = xf.reshape(-1, LANES)
    rows = x2.shape[0]

    if n_lane_pad <= resident_max_elems:
        # ---------- Fast path: whole tensor resident in VMEM, one pass -------- #
        out2 = pl.pallas_call(
            functools.partial(_dorefa_resident_kernel, nbit_w=nbit_w),
            out_shape=jax.ShapeDtypeStruct(x2.shape, orig_dtype),
            grid=(1,),
            in_specs=[pl.BlockSpec((rows, LANES), lambda i: (0, 0))],
            out_specs=pl.BlockSpec((rows, LANES), lambda i: (0, 0)),
            compiler_params=pltpu.CompilerParams(
                dimension_semantics=("arbitrary",),
                vmem_limit_bytes=vmem_limit,
            ),
        )(x2)
    else:
        # ---------------- Tiled two-pass path for large tensors --------------- #
        tile_rows = max(SUBLANES, min(tile_rows, pl.cdiv(rows, SUBLANES) * SUBLANES))
        grid_n = pl.cdiv(rows, tile_rows)

        # Split the blocks across two cores (v7x).  When grid_n is odd the two
        # halves overlap by one block — harmless for a max reduction — so every
        # block index stays in [0, grid_n) and no out-of-bounds DMA is issued.
        steps = pl.cdiv(grid_n, 2)
        core_stride = grid_n - steps

        # Pass 1: per-core 0.5 / tanh(max|x|) partials, each filling an (8,128)
        # block of a (16,128) output.
        mx = pl.pallas_call(
            functools.partial(
                _absmax_kernel,
                valid_rows=rows, tile_rows=tile_rows, core_stride=core_stride),
            out_shape=jax.ShapeDtypeStruct((2 * SUBLANES, LANES), jnp.float32),
            grid=(2, steps),
            in_specs=[pl.BlockSpec((tile_rows, LANES),
                                   lambda c, i: (c * core_stride + i, 0))],
            out_specs=pl.BlockSpec((SUBLANES, LANES), lambda c, i: (c, 0)),
            compiler_params=pltpu.CompilerParams(
                dimension_semantics=("parallel", "arbitrary"),
                vmem_limit_bytes=vmem_limit,
            ),
        )(x2)

        # Pass 2: elementwise tanh + scale + quantize + rescale.
        out2 = pl.pallas_call(
            functools.partial(_quant_kernel, nbit_w=nbit_w),
            out_shape=jax.ShapeDtypeStruct(x2.shape, orig_dtype),
            grid=(grid_n,),
            in_specs=[
                pl.BlockSpec(memory_space=pltpu.MemorySpace.SMEM),
                pl.BlockSpec((tile_rows, LANES), lambda i: (i, 0)),
            ],
            out_specs=pl.BlockSpec((tile_rows, LANES), lambda i: (i, 0)),
            compiler_params=pltpu.CompilerParams(
                dimension_semantics=("parallel",),
                vmem_limit_bytes=vmem_limit,
            ),
        )(mx, x2)

    out_flat = out2.reshape(-1)
    if padded:
        out_flat = out_flat[:n]
    return out_flat.reshape(orig_shape)


# --------------------------- pure-JAX reference ----------------------------- #
def dorefa_w_ref(x, nbit_w):
    """Literal transcription of the PyTorch forward."""
    w = jnp.tanh(x.astype(jnp.float32))
    maxv = jnp.max(jnp.abs(w))
    w = w / (2.0 * maxv) + 0.5
    if nbit_w != 32:
        scale = float(2 ** nbit_w - 1)
        w = jnp.round(scale * w) / scale
    return (2.0 * w - 1.0).astype(x.dtype)


def _check(out, ref, nbit_w):
    out = np.asarray(out, dtype=np.float64)
    ref = np.asarray(ref, dtype=np.float64)
    if nbit_w == 32:
        np.testing.assert_allclose(out, ref, rtol=1e-5, atol=1e-5)
        return
    # For quantized outputs, values sitting numerically on a round() boundary may
    # legitimately land one quantization step apart (tanh ulp / constant-folding
    # differences); allow a tiny fraction of such single-step flips.
    step = 2.0 / (2 ** nbit_w - 1)
    diff = np.abs(out - ref)
    exact = diff <= 1e-5
    boundary_flip = np.abs(diff - step) <= 1e-5
    assert np.all(exact | boundary_flip), float(diff.max())
    assert np.mean(~exact) <= 0.01, float(np.mean(~exact))


if __name__ == "__main__":
    key = jax.random.PRNGKey(0)
    k1, k2 = jax.random.split(key)

    # Typical small weight-like tensor -> resident single-pass fast path.
    x = jax.random.normal(k1, (2, 4, 16, 16), dtype=jnp.float32)
    out = jax.block_until_ready(dorefa_w(x, 2))
    _check(out, dorefa_w_ref(x, 2), 2)

    # Force the tiled two-pass path (exercises the two-core pass-1 reduction).
    out_t = jax.block_until_ready(dorefa_w(x, 32, resident_max_elems=0))
    _check(out_t, dorefa_w_ref(x, 32), 32)

    out_t2 = jax.block_until_ready(dorefa_w(x, 4, resident_max_elems=0))
    _check(out_t2, dorefa_w_ref(x, 4), 4)

    # Ragged element count (1155, not a multiple of 128): lane pad, partial-block
    # masking in pass 1, discarded tail stores in pass 2.
    x_rag = jax.random.normal(k2, (3, 5, 7, 11), dtype=jnp.float32)
    out_r = jax.block_until_ready(dorefa_w(x_rag, 2, resident_max_elems=0))
    _check(out_r, dorefa_w_ref(x_rag, 2), 2)

    # Ragged shape through the resident path as well.
    out_rr = jax.block_until_ready(dorefa_w(x_rag, 3))
    _check(out_rr, dorefa_w_ref(x_rag, 3), 3)

    print("KERNEL_OK")
</pallas_src>

<mosaic_0001>
module attributes {stable_mosaic.version = 11 : i64} {
  func.func @_dorefa_resident_kernel(%arg0: i32, %arg1: memref<16x128xf32, #tpu.memory_space<vmem>>, %arg2: memref<16x128xf32, #tpu.memory_space<vmem>>) attributes {dimension_semantics = [#tpu.dimension_semantics<arbitrary>], iteration_bounds = array<i64: 1>, scalar_prefetch = 0 : i64, scratch_operands = 0 : i64, tpu.core_type = #tpu.core_type<tc>, window_params = [{pipeline_mode = #tpu.pipeline_mode<synchronous>, transform_indices = @transform_0, window_bounds = array<i64: 16, 128>}, {pipeline_mode = #tpu.pipeline_mode<synchronous>, transform_indices = @transform_1, window_bounds = array<i64: 16, 128>}]} {
    %c0 = arith.constant 0 : index
    %c0_0 = arith.constant 0 : index
    %0 = vector.load %arg1[%c0, %c0_0] : memref<16x128xf32, #tpu.memory_space<vmem>>, vector<16x128xf32>
    %1 = math.tanh %0 : vector<16x128xf32>
    %2 = math.absf %1 : vector<16x128xf32>
    %3 = vector.shape_cast %2 : vector<16x128xf32> to vector<2x8x128xf32>
    %cst = arith.constant dense<0xFF800000> : vector<8x128xf32>
    %4 = vector.multi_reduction <maximumf>, %3, %cst [0] : vector<2x8x128xf32> to vector<8x128xf32>
    %5 = vector.shape_cast %4 : vector<8x128xf32> to vector<1x8x128xf32>
    %cst_1 = arith.constant dense<0xFF800000> : vector<1xf32>
    %6 = vector.multi_reduction <maximumf>, %5, %cst_1 [1, 2] : vector<1x8x128xf32> to vector<1xf32>
    %7 = vector.shape_cast %6 : vector<1xf32> to vector<1x1x1xf32>
    %8 = vector.extract %7[0, 0, 0] : f32 from vector<1x1x1xf32>
    %9 = vector.broadcast %8 : f32 to vector<1x1xf32>
    %cst_2 = arith.constant 5.000000e-01 : f32
    %10 = vector.broadcast %cst_2 : f32 to vector<1x1xf32>
    %11 = arith.divf %10, %9 : vector<1x1xf32>
    %cst_3 = arith.constant 3.000000e+00 : f32
    %12 = vector.broadcast %cst_3 : f32 to vector<1x1xf32>
    %13 = arith.mulf %12, %11 : vector<1x1xf32>
    %14 = vector.broadcast %13 : vector<1x1xf32> to vector<16x128xf32>
    %15 = arith.mulf %1, %14 : vector<16x128xf32>
    %cst_4 = arith.constant 1.500000e+00 : f32
    %16 = vector.broadcast %cst_4 : f32 to vector<16x128xf32>
    %17 = arith.addf %15, %16 : vector<16x128xf32>
    %18 = math.roundeven %17 : vector<16x128xf32>
    %cst_5 = arith.constant 0.666666686 : f32
    %19 = vector.broadcast %cst_5 : f32 to vector<16x128xf32>
    %20 = arith.mulf %18, %19 : vector<16x128xf32>
    %cst_6 = arith.constant 1.000000e+00 : f32
    %21 = vector.broadcast %cst_6 : f32 to vector<16x128xf32>
    %22 = arith.subf %20, %21 : vector<16x128xf32>
    %c0_7 = arith.constant 0 : index
    %c0_8 = arith.constant 0 : index
    %23 = vector.load %arg2[%c0_7, %c0_8] : memref<16x128xf32, #tpu.memory_space<vmem>>, vector<16x128xf32>
    tpu.vector_store %arg2[%c0_7, %c0_8], %22 {strides = array<i32>} : memref<16x128xf32, #tpu.memory_space<vmem>>, vector<16x128xf32>,
    return
  }
  func.func @transform_0(%arg0: i32) -> (i32, i32) {
    %c0_i32 = arith.constant 0 : i32
    %c0_i32_0 = arith.constant 0 : i32
    %c0_i32_1 = arith.constant 0 : i32
    return %c0_i32, %c0_i32_0 : i32, i32
  }
  func.func @transform_1(%arg0: i32) -> (i32, i32) {
    %c0_i32 = arith.constant 0 : i32
    %c0_i32_0 = arith.constant 0 : i32
    %c0_i32_1 = arith.constant 0 : i32
    return %c0_i32, %c0_i32_0 : i32, i32
  }
}

</mosaic_0001>

<bundles_post_ra>
// kernel: tpu_custom_call.1
= control target key start
LH: loop header
LB: loop body
LE: loop exit
PB: predicated region body
PF: predicated region fallthrough
CT: control target
= control target key end

     0   :  { %6 = vsyncpa [#allocation3], 0  ;;  %s197_s0 = inlined_call_operand.hbm [shape: f32[16,128], index: 0, kind: input, shape index: {}]   ;;  %s198_s1 = inlined_call_operand.hbm [shape: f32[16,128], index: 1, kind: output, shape index: {}]  }
   0x1   :  { %7 = vsyncpa [#allocation4], 0  ;;  %s12_s8 = sshll.u32 %s197_s0, 4  ;;  %s171_s9 = smov [#allocation2]   ;;  %s13_s8 = int_to_ptr.hbm [resolvable:$true] %s12_s8 }
   0x2   :  { %s14_s10 = sshll.u32 %s171_s9, 4  ;;  %s172_s11 = smov 128   ;;  %s15_s10 = int_to_ptr.vmem [resolvable:$true] %s14_s10 }
   0x3   :  { %s173_s12 = smov 8  }
   0x4   :  { %20 = dma.hbm_to_vmem [thread:$0]  %s13_s8, 256, %s15_s10, [#allocation3], %s172_s11, %s172_s11, %s173_s12  }
   0x5   :  { %167 = dma.done.wait [#allocation3], 256  }
   0x6   :  { %168 = vsyncadd [#allocation3], 4294967040  ;;  %v25_v0 = vld [vmem:[#allocation2] sm:$0xff]  ;;  %v26_v1 = vld [vmem:[#allocation2 + $0x8] sm:$0xff]  ;;  %s174_s13 = smov [#allocation5]   ;;  %s76_s17 = sshll.u32 %s198_s1, 4  ;;  %s77_s17 = int_to_ptr.hbm [resolvable:$true] %s76_s17 }
   0x7   :  { %113 = vtanh.f32 %v25_v0  ;;  %s74_s14 = sshll.u32 %s174_s13, 4  ;;  %s75_s14 = int_to_ptr.vmem [resolvable:$true] %s74_s14 }
   0x8   :  { %115 = vtanh.f32 %v26_v1 }
   0xd   :  { %v114_v2 = vpop.eup %113 }
   0xe   :  { %v116_v3 = vpop.eup %115  ;;  %v29_v4 = vand.u32 2147483647, %v114_v2 }
   0xf   :  { %v30_v5 = vand.u32 2147483647, %v116_v3 }
  0x11   :  { %v31_v6 = vmax.f32 %v29_v4, %v30_v5 }
  0x13   :  { %32 = vmax.xlane.f32.xlu0 %v31_v6 }
  0x86   :  { %v33_v7 = vpop.xlane.xlu0 %32 }
  0x87   :  { %v34_v8 = vrot.slane %v33_v7, 4 }
  0x89   :  { %v35_v9 = vmax.f32 %v33_v7, %v34_v8 }
  0x8b   :  { %v36_v10 = vrot.slane %v35_v9, 2 }
  0x8d   :  { %v37_v11 = vmax.f32 %v35_v9, %v36_v10 }
  0x8f   :  { %v38_v12 = vrot.slane %v37_v11, 1 }
  0x91   :  { %v39_v13 = vmax.f32 %v37_v11, %v38_v12 }
  0x93   :  { %91 = vpush %v39_v13 }
  0xc4   :  { %s92_s0 = spop %91 }
  0xc5   :  { %v41_v14 = vstv %s92_s0 }
  0xc6   :  { %117 = vrcp.f32 %v41_v14  ;;  %v53_v18 = vand.u32 2147483648, %v41_v14  ;;  %v51_v20 = vand.u32 2147483647, %v41_v14  ;;  %vm47_vm1 = vweird.f32 %v41_v14 }
  0xc8   :  { %v54_v22 = vor.u32 1.1754944e-38, %v53_v18  ;;  %vm52_vm3 = vcmp.eq.f32.partialorder %v51_v20, 8.507059e+37 }
  0xcc   :  { %v118_v15 = vpop.eup %117 }
  0xcd   :  { %v43_v16 = vmul.f32 %v118_v15, %v41_v14  ;;  %vm48_vm0 = vweird.f32 %v118_v15 }
  0xce   :  { %vm49_vm2 = vmor %vm47_vm1, %vm48_vm0 }
  0xcf   :  { %v44_v17 = vsub.f32 1.0, %v43_v16 }
  0xd1   :  { %v45_v19 = vmul.f32 %v118_v15, %v44_v17 }
  0xd3   :  { %v46_v21 = vadd.f32 %v118_v15, %v45_v19 }
  0xd5   :  { %v50_v23 = vsel %vm49_vm2, %v118_v15, %v46_v21 }
  0xd6   :  { %v55_v24 = vsel %vm52_vm3, %v54_v22, %v50_v23 }
  0xd7   :  { %v56_v25 = vmul.f32 0.5, %v55_v24 }
  0xd9   :  { %v57_v26 = vmul.f32 3.0, %v56_v25 }
  0xdb   :  { %v58_v27 = vmul.f32 %v114_v2, %v57_v26  ;;  %v59_v28 = vmul.f32 %v116_v3, %v57_v26 }
  0xdd   :  { %v60_v29 = vadd.f32 1.5, %v58_v27  ;;  %v61_v30 = vadd.f32 1.5, %v59_v28 }
  0xdf   :  { %v95_v31 = vcvt.f32.s32 %v60_v29  ;;  %v103_v32 = vcvt.f32.s32 %v61_v30  ;;  %v93_v34 = vand.u32 2147483647, %v60_v29  ;;  %v98_v37 = vand.u32 2147483648, %v60_v29 }
  0xe0   :  { %v101_v38 = vand.u32 2147483647, %v61_v30  ;;  %v106_v40 = vand.u32 2147483648, %v61_v30 }
  0xe1   :  { %v96_v33 = vcvt.s32.f32 %v95_v31  ;;  %v104_v35 = vcvt.s32.f32 %v103_v32  ;;  %vm94_vm4 = vcmp.lt.f32.partialorder %v93_v34, 8388608.0 }
  0xe2   :  { %vm102_vm5 = vcmp.lt.f32.partialorder %v101_v38, 8388608.0 }
  0xe3   :  { %v97_v36 = vand.u32 2147483647, %v96_v33  ;;  %v105_v39 = vand.u32 2147483647, %v104_v35 }
  0xe5   :  { %v99_v41 = vor.u32 %v98_v37, %v97_v36  ;;  %v107_v42 = vor.u32 %v106_v40, %v105_v39 }
  0xe7   :  { %v100_v43 = vsel %vm94_vm4, %v99_v41, %v60_v29  ;;  %v108_v44 = vsel %vm102_vm5, %v107_v42, %v61_v30 }
  0xe8   :  { %v64_v45 = vmul.f32 0.6666667, %v100_v43  ;;  %v65_v46 = vmul.f32 0.6666667, %v108_v44 }
  0xea   :  { %v89_v47 = vadd.f32 -1.0, %v64_v45  ;;  %v90_v48 = vadd.f32 -1.0, %v65_v46 }
  0xec   :  { %68 = vst [vmem:[#allocation5] sm:$0xff] %v89_v47 }
  0xed   :  { %69 = vst [vmem:[#allocation5 + $0x8] sm:$0xff] %v90_v48 }
  0xee   :  { %82 = dma.vmem_to_hbm [thread:$0]  %s75_s14, 256, %s77_s17, [#allocation4], %s172_s11, %s172_s11, %s173_s12  }
  0xef   :  { %169 = dma.done.wait [#allocation4], 256  }
  0xf0   :  { %170 = vsyncadd [#allocation4], 4294967040 }
  0xf1   :  { %87 = vsyncpa [#allocation3], 1 }
  0xf2   :  { %88 = vsyncpa [#allocation4], 1 }

</bundles_post_ra>
